<compile_context>
chip_gen: v5e
topology: v5e:2x2
jax: 0.10.0
libtpu: 0.0.40
codegen_flags: <defaults>
</compile_context>

<pallas_src>
import numpy as np
import jax
import jax.numpy as jnp
from jax.experimental import pallas as pl
from jax.experimental.pallas import tpu as pltpu

N_NODES = 36          # primary_caps_filter_dimenesion (6x6 grid)
CAPS_DIM = 8          # primary_caps_dimension
GRID_N = 6
FLAT = N_NODES * CAPS_DIM     # 288
LANE_PAD = 384                # 288 rounded up to a lane multiple (VMEM budgeting only)


def build_mean_adj() -> np.ndarray:
    """Dense degree-normalized adjacency: A[i, j] = 1/deg(i) if |i-j|_manhattan == 1."""
    A = np.zeros((N_NODES, N_NODES), dtype=np.float32)
    for a in range(N_NODES):
        r1, c1 = divmod(a, GRID_N)
        for b in range(N_NODES):
            r2, c2 = divmod(b, GRID_N)
            if abs(r1 - r2) + abs(c1 - c2) == 1:
                A[a, b] = 1.0
    deg = A.sum(axis=1, keepdims=True)
    return (A / np.maximum(deg, 1.0)).astype(np.float32)


def build_fused_operator(adj_mean, w_l, w_r, b_l):
    """Fold SAGEConv into one (288,288) bf16 operator + (1,288) f32 bias.

    M[j*8+d, i*8+o] = A[i, j] * Wl^T[d, o] + I[i, j] * Wr^T[d, o]
    bias[0, i*8+o]  = b_l[o]
    (Callers can cache the result outside the per-call path.)
    """
    A = jnp.asarray(adj_mean, jnp.float32)                 # (36, 36), row-normalized
    wl_t = jnp.asarray(w_l, jnp.float32).T                 # (in, out)
    wr_t = jnp.asarray(w_r, jnp.float32).T
    M = jnp.kron(A.T, wl_t) + jnp.kron(jnp.eye(N_NODES, dtype=jnp.float32), wr_t)
    bias = jnp.tile(jnp.asarray(b_l, jnp.float32).reshape(1, CAPS_DIM), (1, N_NODES))
    return M.astype(jnp.bfloat16), bias                    # bias stays f32 (epilogue add)


def sage_fused_kernel(x_ref, m_ref, b_ref, out_ref):
    # x_ref:   (TB, 288)  bf16 flattened node features for TB graphs
    # m_ref:   (288, 288) bf16 fused operator (VMEM-resident)
    # b_ref:   (1, 288)   f32  tiled lin_l bias (VMEM-resident)
    # out_ref: (TB, 288)  f32
    out_ref[...] = (
        jnp.dot(x_ref[...], m_ref[...], preferred_element_type=jnp.float32)
        + b_ref[...]
    ).astype(out_ref.dtype)


def _round_up(a: int, b: int) -> int:
    return ((a + b - 1) // b) * b


def gnn_capsule_layer(x, adj_mean, w_l, w_r, b_l, *, tb=2048, xla_fallback_batch=0):
    """x: (B, 36, 8) float32 -> (B, 36, 8) float32."""
    B = x.shape[0]
    x_flat = jnp.asarray(x, jnp.float32).reshape(B, FLAT).astype(jnp.bfloat16)
    M, bias = build_fused_operator(adj_mean, w_l, w_r, b_l)

    if B <= xla_fallback_batch:
        # Tiny batches: launch + single-tile warmup dominates; plain XLA is as fast.
        out = jnp.dot(x_flat, M, preferred_element_type=jnp.float32) + bias
        return out.reshape(B, N_NODES, CAPS_DIM)

    # Batch tiling: multiples of 8 (sublane), >= 8 grid steps when the batch allows
    # (megacore sharding + pipeline overlap), and pad B so the last tile is full.
    B8 = _round_up(B, 8)
    tb_split = _round_up(pl.cdiv(B8, 8), 8)
    TB = max(8, min(int(tb), tb_split))
    num_tiles = pl.cdiv(B8, TB)
    B_pad = num_tiles * TB
    if B_pad != B:
        x_flat = jnp.pad(x_flat, ((0, B_pad - B), (0, 0)))

    # VMEM budget (lane-padded 288 -> 384): bf16 in + f32 out, double-buffered,
    # plus the resident constants; add generous headroom for compiler scratch.
    vmem_bytes = 2 * TB * LANE_PAD * (2 + 4)
    vmem_bytes += 2 * (FLAT * LANE_PAD * 2 + 8 * LANE_PAD * 4)
    vmem_limit = min(int(vmem_bytes * 1.5) + (4 << 20), 48 << 20)

    cost = pl.CostEstimate(
        flops=2 * B_pad * FLAT * FLAT,
        transcendentals=0,
        bytes_accessed=B_pad * FLAT * (2 + 4) + FLAT * FLAT * 2 + FLAT * 4,
    )

    out_flat = pl.pallas_call(
        sage_fused_kernel,
        out_shape=jax.ShapeDtypeStruct((B_pad, FLAT), jnp.float32),
        grid_spec=pltpu.PrefetchScalarGridSpec(
            num_scalar_prefetch=0,
            grid=(num_tiles,),
            in_specs=[
                pl.BlockSpec((TB, FLAT), lambda t: (t, 0)),
                pl.BlockSpec((FLAT, FLAT), lambda t: (0, 0)),   # VMEM-resident operator
                pl.BlockSpec((1, FLAT), lambda t: (0, 0)),      # VMEM-resident bias
            ],
            out_specs=pl.BlockSpec((TB, FLAT), lambda t: (t, 0)),
        ),
        compiler_params=pltpu.CompilerParams(
            dimension_semantics=("parallel",),
            vmem_limit_bytes=vmem_limit,
        ),
        cost_estimate=cost,
    )(x_flat, M, bias)

    return out_flat[:B].reshape(B, N_NODES, CAPS_DIM)


def _reference(x, adj_mean, w_l, w_r, b_l):
    # Pure f32 reference of the SAGEConv forward.
    agg = jnp.einsum("nm,bmd->bnd", jnp.asarray(adj_mean), x)
    return (jnp.einsum("bnd,od->bno", agg, w_l)
            + jnp.einsum("bnd,od->bno", x, w_r)
            + b_l)


if __name__ == "__main__":
    key = jax.random.PRNGKey(0)
    k_x, k_wl, k_wr, k_b, k_x2 = jax.random.split(key, 5)

    adj_mean = build_mean_adj()

    # Deterministic synthetic SAGEConv parameters (lin_l: weight+bias, lin_r: weight only)
    w_l = jax.random.normal(k_wl, (CAPS_DIM, CAPS_DIM), dtype=jnp.float32) * 0.3
    w_r = jax.random.normal(k_wr, (CAPS_DIM, CAPS_DIM), dtype=jnp.float32) * 0.3
    b_l = jax.random.normal(k_b, (CAPS_DIM,), dtype=jnp.float32) * 0.1

    # Small shape consistent with the module's forward: (B, 36, 8)
    B = 2
    x = jax.random.normal(k_x, (B, N_NODES, CAPS_DIM), dtype=jnp.float32)

    out = jax.block_until_ready(gnn_capsule_layer(x, adj_mean, w_l, w_r, b_l))
    ref = _reference(x, adj_mean, w_l, w_r, b_l)
    # bf16 streamed operands (f32 accumulation) -> ~1e-2-level error vs the f32 reference.
    np.testing.assert_allclose(np.asarray(out), np.asarray(ref), rtol=5e-2, atol=5e-2)

    # Multi-tile grid + ragged-batch padding path (B=100 -> TB=16, 7 tiles, pad to 112).
    B2 = 100
    x2 = jax.random.normal(k_x2, (B2, N_NODES, CAPS_DIM), dtype=jnp.float32)
    out2 = jax.block_until_ready(gnn_capsule_layer(x2, adj_mean, w_l, w_r, b_l, tb=16))
    ref2 = _reference(x2, adj_mean, w_l, w_r, b_l)
    np.testing.assert_allclose(np.asarray(out2), np.asarray(ref2), rtol=5e-2, atol=5e-2)

    # Small-batch plain-XLA fallback path.
    out3 = jax.block_until_ready(
        gnn_capsule_layer(x, adj_mean, w_l, w_r, b_l, xla_fallback_batch=256))
    np.testing.assert_allclose(np.asarray(out3), np.asarray(ref), rtol=5e-2, atol=5e-2)

    print("KERNEL_OK")
</pallas_src>

<mosaic_0001>
module attributes {stable_mosaic.version = 11 : i64} {
  func.func @sage_fused_kernel(%arg0: i32, %arg1: memref<8x288xbf16, #tpu.memory_space<vmem>>, %arg2: memref<288x288xbf16, #tpu.memory_space<vmem>>, %arg3: memref<1x288xf32, #tpu.memory_space<vmem>>, %arg4: memref<8x288xf32, #tpu.memory_space<vmem>>) attributes {dimension_semantics = [#tpu.dimension_semantics<parallel>], iteration_bounds = array<i64: 1>, scalar_prefetch = 0 : i64, scratch_operands = 0 : i64, tpu.core_type = #tpu.core_type<tc>, window_params = [{transform_indices = @transform_0, window_bounds = array<i64: 8, 288>}, {pipeline_mode = #tpu.pipeline_mode<synchronous>, transform_indices = @transform_1, window_bounds = array<i64: 288, 288>}, {pipeline_mode = #tpu.pipeline_mode<synchronous>, transform_indices = @transform_2, window_bounds = array<i64: 1, 288>}, {transform_indices = @transform_3, window_bounds = array<i64: 8, 288>}]} {
    %c0 = arith.constant 0 : index
    %c0_0 = arith.constant 0 : index
    %0 = vector.load %arg1[%c0, %c0_0] : memref<8x288xbf16, #tpu.memory_space<vmem>>, vector<8x288xbf16>
    %c0_1 = arith.constant 0 : index
    %c0_2 = arith.constant 0 : index
    %1 = vector.load %arg2[%c0_1, %c0_2] : memref<288x288xbf16, #tpu.memory_space<vmem>>, vector<288x288xbf16>
    %cst = arith.constant dense<0.000000e+00> : vector<8x288xf32>
    %2 = tpu.matmul %0, %1, %cst {dimension_numbers = #tpu.dot_dimension_numbers<[1], [0], [0], [1], [0, 0, 1, 1], [], []>} : vector<8x288xbf16>, vector<288x288xbf16>, vector<8x288xf32> -> vector<8x288xf32>
    %c0_3 = arith.constant 0 : index
    %c0_4 = arith.constant 0 : index
    %3 = vector.load %arg3[%c0_3, %c0_4] : memref<1x288xf32, #tpu.memory_space<vmem>>, vector<1x288xf32>
    %4 = vector.broadcast %3 : vector<1x288xf32> to vector<8x288xf32>
    %5 = arith.addf %2, %4 : vector<8x288xf32>
    %c0_5 = arith.constant 0 : index
    %c0_6 = arith.constant 0 : index
    %6 = vector.load %arg4[%c0_5, %c0_6] : memref<8x288xf32, #tpu.memory_space<vmem>>, vector<8x288xf32>
    tpu.vector_store %arg4[%c0_5, %c0_6], %5 {strides = array<i32>} : memref<8x288xf32, #tpu.memory_space<vmem>>, vector<8x288xf32>,
    return
  }
  func.func @transform_0(%arg0: i32) -> (i32, i32) {
    %c0_i32 = arith.constant 0 : i32
    %c0_i32_0 = arith.constant 0 : i32
    return %arg0, %c0_i32 : i32, i32
  }
  func.func @transform_1(%arg0: i32) -> (i32, i32) {
    %c0_i32 = arith.constant 0 : i32
    %c0_i32_0 = arith.constant 0 : i32
    %c0_i32_1 = arith.constant 0 : i32
    return %c0_i32, %c0_i32_0 : i32, i32
  }
  func.func @transform_2(%arg0: i32) -> (i32, i32) {
    %c0_i32 = arith.constant 0 : i32
    %c0_i32_0 = arith.constant 0 : i32
    %c0_i32_1 = arith.constant 0 : i32
    return %c0_i32, %c0_i32_0 : i32, i32
  }
  func.func @transform_3(%arg0: i32) -> (i32, i32) {
    %c0_i32 = arith.constant 0 : i32
    %c0_i32_0 = arith.constant 0 : i32
    return %arg0, %c0_i32 : i32, i32
  }
}

</mosaic_0001>

<bundles_post_ra>
// kernel: tpu_custom_call.1
= control target key start
LH: loop header
LB: loop body
LE: loop exit
PB: predicated region body
PF: predicated region fallthrough
CT: control target
= control target key end

     0   :  { %8 = vsyncpa [#allocation3], 0  ;;  %s1019_s0 = inlined_call_operand.hbm [shape: bf16[8,288], index: 0, kind: input, shape index: {}]   ;;  %s1020_s1 = inlined_call_operand.hbm [shape: bf16[288,288], index: 1, kind: input, shape index: {}]   ;;  %s1021_s2 = inlined_call_operand.hbm [shape: f32[1,288], index: 2, kind: input, shape index: {}]   ;;  %s1022_s3 = inlined_call_operand.hbm [shape: f32[8,288], index: 3, kind: output, shape index: {}]  }
   0x1   :  { %9 = vsyncpa [#allocation6], 0  ;;  %s26_s14 = sshll.u32 %s1020_s1, 4  ;;  %s27_s14 = int_to_ptr.hbm [resolvable:$true] %s26_s14 }
   0x2   :  { %10 = vsyncpa [#allocation4], 0  ;;  %s962_s15 = smov [#allocation5]   ;;  %s16_s19 = sshll.u32 %s1019_s0, 4  ;;  %s17_s19 = int_to_ptr.hbm [resolvable:$true] %s16_s19 }
   0x3   :  { %s28_s16 = sshll.u32 %s962_s15, 4  ;;  %s963_s20 = smov 192   ;;  %s29_s16 = int_to_ptr.vmem [resolvable:$true] %s28_s16 }
   0x4   :  { %s964_s21 = smov 12   ;;  %s965_s22 = smov [#allocation2]  }
   0x5   :  { %34 = dma.hbm_to_vmem [thread:$0]  %s27_s14, 6912, %s29_s16, [#allocation6], %s963_s20, %s963_s20, %s964_s21  }
   0x6   :  { %s18_s23 = sshll.u32 %s965_s22, 4  ;;  %s40_s26 = sshll.u32 %s1021_s2, 4  ;;  %s19_s23 = int_to_ptr.vmem [resolvable:$true] %s18_s23  ;;  %s41_s26 = int_to_ptr.hbm [resolvable:$true] %s40_s26 }
   0x7   :  { %21 = dma.hbm_to_vmem [thread:$0]  %s17_s19, 192, %s19_s23, [#allocation3]  }
   0x8   :  { %s966_s1 = smov [#allocation7]  }
   0x9   :  { %s42_s27 = sshll.u32 %s966_s1, 4  ;;  %s43_s27 = int_to_ptr.vmem [resolvable:$true] %s42_s27 }
   0xa   :  { %45 = dma.hbm_to_vmem [thread:$0]  %s41_s26, 48, %s43_s27, [#allocation6]  }
   0xb   :  { %956 = dma.done.wait [#allocation3], 192  }
   0xc   :  { %957 = vsyncadd [#allocation3], 4294967104 }
   0xd   :  { %958 = dma.done.wait [#allocation6], 6960  }
   0xe   :  { %959 = vsyncadd [#allocation6], 4294960336  ;;  %v667_v0 = vld [vmem:[#allocation5 + $0xa8] sm:$0xf]  ;;  %v822_v1 = vld [vmem:[#allocation5 + $0xb0] sm:$0xf0] }
   0xf   :  { %v763_v2 = vld [vmem:[#allocation5 + $0x168] sm:$0xf]  ;;  %v668_v3 = vor.u32 %v822_v1, %v667_v0  ;;  %v846_v4 = vld [vmem:[#allocation5 + $0x170] sm:$0xf0]  ;;  %v787_v5 = vld [vmem:[#allocation5 + $0x198] sm:$0xf] }
  0x10   :  { %v852_v6 = vld [vmem:[#allocation5 + $0x1a0] sm:$0xf0]  ;;  %v764_v7 = vor.u32 %v846_v4, %v763_v2  ;;  %v821_v9 = vld [vmem:[#allocation5 + $0xac] sm:$0xf]  ;;  %v669_v10 = vld [vmem:[#allocation5 + $0xb4] sm:$0xf0] }
  0x11   :  { %v788_v8 = vor.u32 %v852_v6, %v787_v5  ;;  %v655_v11 = vld [vmem:[#allocation5 + $0x90] sm:$0xf]  ;;  %443 = vmatpush.bf16.msra.mxu0 %v668_v3  ;;  %v672_v12 = vor.u32 %v821_v9, %v669_v10  ;;  %v819_v13 = vld [vmem:[#allocation5 + $0x98] sm:$0xf0]  ;;  %v775_v18 = vld [vmem:[#allocation5 + $0x180] sm:$0xf] }
  0x12   :  { %v751_v14 = vld [vmem:[#allocation5 + $0x150] sm:$0xf]  ;;  %v843_v15 = vld [vmem:[#allocation5 + $0x158] sm:$0xf0]  ;;  %456 = vmatpush.bf16.msra.mxu1 %v764_v7  ;;  %v656_v16 = vor.u32 %v819_v13, %v655_v11  ;;  %v849_v19 = vld [vmem:[#allocation5 + $0x188] sm:$0xf0] }
  0x13   :  { %475 = vmatpush.bf16.msra.mxu2 %v788_v8  ;;  %v752_v17 = vor.u32 %v843_v15, %v751_v14  ;;  %v818_v20 = vld [vmem:[#allocation5 + $0x94] sm:$0xf]  ;;  %482 = vmatpush.bf16.msra.mxu3 %v672_v12  ;;  %v776_v21 = vor.u32 %v849_v19, %v775_v18  ;;  %v657_v22 = vld [vmem:[#allocation5 + $0x9c] sm:$0xf0]  ;;  %v845_v23 = vld [vmem:[#allocation5 + $0x16c] sm:$0xf] }
  0x14   :  { %v765_v24 = vld [vmem:[#allocation5 + $0x174] sm:$0xf0]  ;;  %v660_v25 = vor.u32 %v818_v20, %v657_v22  ;;  %v816_v28 = vld [vmem:[#allocation5 + $0x80] sm:$0xf0]  ;;  %v815_v32 = vld [vmem:[#allocation5 + $0x7c] sm:$0xf] }
  0x15   :  { %v768_v26 = vor.u32 %v845_v23, %v765_v24  ;;  %v643_v27 = vld [vmem:[#allocation5 + $0x78] sm:$0xf]  ;;  %444 = vmatpush.bf16.msra.mxu0 %v656_v16  ;;  %v840_v31 = vld [vmem:[#allocation5 + $0x140] sm:$0xf0]  ;;  %v645_v33 = vld [vmem:[#allocation5 + $0x84] sm:$0xf0] }
  0x16   :  { %v739_v29 = vld [vmem:[#allocation5 + $0x138] sm:$0xf]  ;;  %v644_v30 = vor.u32 %v816_v28, %v643_v27  ;;  %457 = vmatpush.bf16.msra.mxu1 %v752_v17  ;;  %v842_v35 = vld [vmem:[#allocation5 + $0x154] sm:$0xf]  ;;  %v753_v36 = vld [vmem:[#allocation5 + $0x15c] sm:$0xf0]  ;;  %v648_v38 = vor.u32 %v815_v32, %v645_v33 }
  0x17   :  { %476 = vmatpush.bf16.msra.mxu2 %v776_v21  ;;  %v740_v34 = vor.u32 %v840_v31, %v739_v29  ;;  %v631_v37 = vld [vmem:[#allocation5 + $0x60] sm:$0xf]  ;;  %483 = vmatpush.bf16.msra.mxu3 %v660_v25  ;;  %v756_v39 = vor.u32 %v842_v35, %v753_v36  ;;  %v813_v40 = vld [vmem:[#allocation5 + $0x68] sm:$0xf0]  ;;  %v812_v43 = vld [vmem:[#allocation5 + $0x64] sm:$0xf] }
  0x18   :  { %v727_v41 = vld [vmem:[#allocation5 + $0x120] sm:$0xf]  ;;  %v837_v42 = vld [vmem:[#allocation5 + $0x128] sm:$0xf0]  ;;  %v633_v44 = vld [vmem:[#allocation5 + $0x6c] sm:$0xf0]  ;;  %v632_v46 = vor.u32 %v813_v40, %v631_v37 }
  0x19   :  { %v839_v45 = vld [vmem:[#allocation5 + $0x13c] sm:$0xf]  ;;  %445 = vmatpush.bf16.msra.mxu0 %v644_v30  ;;  %v741_v47 = vld [vmem:[#allocation5 + $0x144] sm:$0xf0]  ;;  %v728_v48 = vor.u32 %v837_v42, %v727_v41  ;;  %v810_v50 = vld [vmem:[#allocation5 + $0x50] sm:$0xf0]  ;;  %v636_v51 = vor.u32 %v812_v43, %v633_v44 }
  0x1a   :  { %458 = vmatpush.bf16.msra.mxu1 %v740_v34  ;;  %v619_v49 = vld [vmem:[#allocation5 + $0x48] sm:$0xf]  ;;  %v744_v52 = vor.u32 %v839_v45, %v741_v47  ;;  %v834_v54 = vld [vmem:[#allocation5 + $0x110] sm:$0xf0]  ;;  %v809_v55 = vld [vmem:[#allocation5 + $0x4c] sm:$0xf] }
  0x1b   :  { %495 = vmatpush.bf16.msrb.mxu2 %v768_v26  ;;  %484 = vmatpush.bf16.msra.mxu3 %v648_v38  ;;  %v715_v53 = vld [vmem:[#allocation5 + $0x108] sm:$0xf]  ;;  %v621_v56 = vld [vmem:[#allocation5 + $0x54] sm:$0xf0]  ;;  %v836_v57 = vld [vmem:[#allocation5 + $0x124] sm:$0xf]  ;;  %v620_v59 = vor.u32 %v810_v50, %v619_v49 }
  0x1c   :  { %v729_v58 = vld [vmem:[#allocation5 + $0x12c] sm:$0xf0]  ;;  %v60_v60 = vld [vmem:[#allocation2 + $0x8] sm:$0xf]  ;;  %v716_v61 = vor.u32 %v834_v54, %v715_v53  ;;  %vm439_vm0 = vcmask 261120   ;;  %v624_v1 = vor.u32 %v809_v55, %v621_v56  ;;  %v59_v27 = vld [vmem:[#allocation2] sm:$0xff] }
  0x1d   :  { %446 = vmatpush.bf16.msra.mxu0 %v632_v46  ;;  %v607_v62 = vld [vmem:[#allocation5 + $0x30] sm:$0xf]  ;;  %v807_v63 = vld [vmem:[#allocation5 + $0x38] sm:$0xf0]  ;;  %v145_v0 = vunpack.c.l.b16 %v60_v60  ;;  %v732_v2 = vor.u32 %v836_v57, %v729_v58  ;;  %v806_v5 = vld [vmem:[#allocation5 + $0x34] sm:$0xf]  ;;  %v143_v40 = vunpack.c.l.b16 %v59_v27  ;;  %v144_v41 = vunpack.c.h.b16 %v59_v27 }
  0x1e   :  { %459 = vmatpush.bf16.msra.mxu1 %v728_v48  ;;  %v703_v3 = vld [vmem:[#allocation5 + $0xf0] sm:$0xf]  ;;  %v831_v4 = vld [vmem:[#allocation5 + $0xf8] sm:$0xf0]  ;;  %v609_v7 = vld [vmem:[#allocation5 + $0x3c] sm:$0xf0]  ;;  %v608_v10 = vor.u32 %v807_v63, %v607_v62 }
  0x1f   :  { %496 = vmatpush.bf16.msrb.mxu2 %v756_v39  ;;  %485 = vmatpush.bf16.msra.mxu3 %v636_v51  ;;  %v997_v6 = vpack.c.b16 %v145_v0, %v145_v0  ;;  %v833_v8 = vld [vmem:[#allocation5 + $0x10c] sm:$0xf]  ;;  %v717_v9 = vld [vmem:[#allocation5 + $0x114] sm:$0xf0]  ;;  %v704_v11 = vor.u32 %v831_v4, %v703_v3  ;;  %v804_v13 = vld [vmem:[#allocation5 + $0x20] sm:$0xf0]  ;;  %v612_v14 = vor.u32 %v806_v5, %v609_v7 }
  0x20   :  { %v595_v12 = vld [vmem:[#allocation5 + $0x18] sm:$0xf]  ;;  %v720_v15 = vor.u32 %v833_v8, %v717_v9  ;;  %v828_v17 = vld [vmem:[#allocation5 + $0xe0] sm:$0xf0]  ;;  %v803_v18 = vld [vmem:[#allocation5 + $0x1c] sm:$0xf]  ;;  %v1001_v55 = vpack.c.b16 %v143_v40, %v143_v40  ;;  %v1003_v56 = vpack.c.b16 %v144_v41, %v144_v41 }
  0x21   :  { %447 = vmatpush.bf16.msra.mxu0 %v620_v59  ;;  %797 = vmatmul.msk.bf16.vlgmr.msra.gmra.mxu2 %vm439_vm0, %v997_v6  ;;  %v691_v16 = vld [vmem:[#allocation5 + $0xd8] sm:$0xf]  ;;  %v597_v19 = vld [vmem:[#allocation5 + $0x24] sm:$0xf0]  ;;  %v830_v20 = vld [vmem:[#allocation5 + $0xf4] sm:$0xf]  ;;  %v596_v22 = vor.u32 %v804_v13, %v595_v12 }
  0x22   :  { %460 = vmatpush.bf16.msra.mxu1 %v716_v61  ;;  %v705_v21 = vld [vmem:[#allocation5 + $0xfc] sm:$0xf0]  ;;  %v692_v24 = vor.u32 %v828_v17, %v691_v16  ;;  %v801_v25 = vld [vmem:[#allocation5 + $0x8] sm:$0xf0]  ;;  %v600_v28 = vor.u32 %v803_v18, %v597_v19  ;;  %v800_v31 = vld [vmem:[#allocation5 + $0x4] sm:$0xf] }
  0x23   :  { %497 = vmatpush.bf16.msrb.mxu2 %v744_v52  ;;  %486 = vmatpush.bf16.msra.mxu3 %v624_v1  ;;  %v583_v23 = vld [vmem:[#allocation5] sm:$0xf]  ;;  %v708_v29 = vor.u32 %v830_v20, %v705_v21  ;;  %v825_v30 = vld [vmem:[#allocation5 + $0xc8] sm:$0xf0]  ;;  %v585_v32 = vld [vmem:[#allocation5 + $0xc] sm:$0xf0] }
  0x24   :  { %v679_v26 = vld [vmem:[#allocation5 + $0xc0] sm:$0xf]  ;;  %v827_v33 = vld [vmem:[#allocation5 + $0xdc] sm:$0xf]  ;;  %v693_v34 = vld [vmem:[#allocation5 + $0xe4] sm:$0xf0]  ;;  %v584_v36 = vor.u32 %v801_v25, %v583_v23  ;;  %v588_v44 = vor.u32 %v800_v31, %v585_v32 }
  0x25   :  { %448 = vmatpush.bf16.msra.mxu0 %v608_v10  ;;  %v675_v35 = vld [vmem:[#allocation5 + $0xb0] sm:$0xf]  ;;  %v823_v37 = vld [vmem:[#allocation5 + $0xb8] sm:$0xf0]  ;;  %v680_v42 = vor.u32 %v825_v30, %v679_v26  ;;  %v824_v43 = vld [vmem:[#allocation5 + $0xc4] sm:$0xf]  ;;  %v696_v45 = vor.u32 %v827_v33, %v693_v34 }
  0x26   :  { %461 = vmatpush.bf16.msra.mxu1 %v704_v11  ;;  %v771_v38 = vld [vmem:[#allocation5 + $0x170] sm:$0xf]  ;;  %v847_v39 = vld [vmem:[#allocation5 + $0x178] sm:$0xf0]  ;;  %v789_v48 = vld [vmem:[#allocation5 + $0x1a4] sm:$0xf0]  ;;  %v676_v49 = vor.u32 %v823_v37, %v675_v35 }
  0x27   :  { %498 = vmatpush.bf16.msrb.mxu2 %v732_v2  ;;  %487 = vmatpush.bf16.msra.mxu3 %v612_v14  ;;  %v681_v46 = vld [vmem:[#allocation5 + $0xcc] sm:$0xf0]  ;;  %v851_v47 = vld [vmem:[#allocation5 + $0x19c] sm:$0xf]  ;;  %v772_v50 = vor.u32 %v847_v39, %v771_v38  ;;  %v663_v51 = vld [vmem:[#allocation5 + $0x98] sm:$0xf] }
  0x28   :  { %v820_v52 = vld [vmem:[#allocation5 + $0xa0] sm:$0xf0]  ;;  %v759_v53 = vld [vmem:[#allocation5 + $0x158] sm:$0xf]  ;;  %v792_v54 = vor.u32 %v851_v47, %v789_v48  ;;  %v777_v59 = vld [vmem:[#allocation5 + $0x18c] sm:$0xf0]  ;;  %v684_v63 = vor.u32 %v824_v43, %v681_v46 }
  0x29   :  { %449 = vmatpush.bf16.msra.mxu0 %v596_v22  ;;  %v844_v57 = vld [vmem:[#allocation5 + $0x160] sm:$0xf0]  ;;  %v795_v60 = vld [vmem:[#allocation5 + $0x1a0] sm:$0xf]  ;;  %v853_v61 = vld [vmem:[#allocation5 + $0x1a8] sm:$0xf0]  ;;  %v664_v0 = vor.u32 %v820_v52, %v663_v51 }
  0x2a   :  { %462 = vmatpush.bf16.msra.mxu1 %v692_v24  ;;  %v848_v58 = vld [vmem:[#allocation5 + $0x184] sm:$0xf]  ;;  %v760_v1 = vor.u32 %v844_v57, %v759_v53  ;;  %v651_v2 = vld [vmem:[#allocation5 + $0x80] sm:$0xf]  ;;  %v817_v3 = vld [vmem:[#allocation5 + $0x88] sm:$0xf0]  ;;  %v796_v7 = vor.u32 %v853_v61, %v795_v60 }
  0x2b   :  { %499 = vmatpush.bf16.msrb.mxu2 %v720_v15  ;;  %488 = vmatpush.bf16.msra.mxu3 %v600_v28  ;;  %v780_v62 = vor.u32 %v848_v58, %v777_v59  ;;  %v747_v4 = vld [vmem:[#allocation5 + $0x140] sm:$0xf]  ;;  %v841_v5 = vld [vmem:[#allocation5 + $0x148] sm:$0xf0]  ;;  %v783_v8 = vld [vmem:[#allocation5 + $0x188] sm:$0xf]  ;;  %v652_v10 = vor.u32 %v817_v3, %v651_v2 }
  0x2c   :  { %v850_v9 = vld [vmem:[#allocation5 + $0x190] sm:$0xf0]  ;;  %v748_v11 = vor.u32 %v841_v5, %v747_v4  ;;  %v639_v12 = vld [vmem:[#allocation5 + $0x68] sm:$0xf]  ;;  %v627_v19 = vld [vmem:[#allocation5 + $0x50] sm:$0xf] }
  0x2d   :  { %450 = vmatpush.bf16.msra.mxu0 %v584_v36  ;;  %v814_v13 = vld [vmem:[#allocation5 + $0x70] sm:$0xf0]  ;;  %v735_v14 = vld [vmem:[#allocation5 + $0x128] sm:$0xf]  ;;  %v784_v16 = vor.u32 %v850_v9, %v783_v8  ;;  %v811_v20 = vld [vmem:[#allocation5 + $0x58] sm:$0xf0] }
  0x2e   :  { %463 = vmatpush.bf16.msra.mxu1 %v680_v42  ;;  %v838_v15 = vld [vmem:[#allocation5 + $0x130] sm:$0xf0]  ;;  %v640_v17 = vor.u32 %v814_v13, %v639_v12  ;;  %v723_v21 = vld [vmem:[#allocation5 + $0x110] sm:$0xf]  ;;  %v835_v22 = vld [vmem:[#allocation5 + $0x118] sm:$0xf0]  ;;  %v628_v23 = vor.u32 %v811_v20, %v627_v19 }
  0x2f   :  { %500 = vmatpush.bf16.msrb.mxu2 %v708_v29  ;;  %489 = vmatpush.bf16.msra.mxu3 %v588_v44  ;;  %v736_v18 = vor.u32 %v838_v15, %v735_v14  ;;  %v724_v24 = vor.u32 %v835_v22, %v723_v21  ;;  %v615_v25 = vld [vmem:[#allocation5 + $0x38] sm:$0xf]  ;;  %v808_v26 = vld [vmem:[#allocation5 + $0x40] sm:$0xf0]  ;;  %v603_v31 = vld [vmem:[#allocation5 + $0x20] sm:$0xf] }
  0x30   :  { %451 = vmatmul.bf16.vlgmr.msra.gmra.mxu0 %v1001_v55  ;;  %v711_v27 = vld [vmem:[#allocation5 + $0xf8] sm:$0xf]  ;;  %v832_v28 = vld [vmem:[#allocation5 + $0x100] sm:$0xf0]  ;;  %v616_v29 = vor.u32 %v808_v26, %v615_v25  ;;  %v805_v32 = vld [vmem:[#allocation5 + $0x28] sm:$0xf0] }
  0x31   :  { %514 = vmatpush.bf16.msrb.mxu0 %v792_v54  ;;  %464 = vmatmul.bf16.vlgmr.msra.gmra.mxu1 %v1003_v56  ;;  %v712_v30 = vor.u32 %v832_v28, %v711_v27  ;;  %v699_v33 = vld [vmem:[#allocation5 + $0xe0] sm:$0xf]  ;;  %v829_v34 = vld [vmem:[#allocation5 + $0xe8] sm:$0xf0]  ;;  %v604_v35 = vor.u32 %v805_v32, %v603_v31  ;;  %v591_v37 = vld [vmem:[#allocation5 + $0x8] sm:$0xf] }
  0x32   :  { %521 = vmatpush.bf16.msrb.mxu1 %v676_v49  ;;  %490 = vmatmul.bf16.vlgmr.msra.gmra.mxu3 %v1001_v55  ;;  %v700_v36 = vor.u32 %v829_v34, %v699_v33  ;;  %v802_v38 = vld [vmem:[#allocation5 + $0x10] sm:$0xf0]  ;;  %v687_v39 = vld [vmem:[#allocation5 + $0xc8] sm:$0xf]  ;;  %v133_v44 = vld [vmem:[#allocation7] sm:$0x7] }
  0x33   :  { %501 = vmatpush.bf16.msrb.mxu2 %v696_v45  ;;  %534 = vmatpush.bf16.msrb.mxu3 %v772_v50  ;;  %v826_v40 = vld [vmem:[#allocation5 + $0xd0] sm:$0xf0]  ;;  %v592_v41 = vor.u32 %v802_v38, %v591_v37  ;;  %v135_v45 = vperm.slane %v133_v44, 0  ;;  %s967_s0 = smov [#allocation8]   ;;  %s570_s30 = sshll.u32 %s1022_s3, 4  ;;  %s571_s30 = int_to_ptr.hbm [resolvable:$true] %s570_s30 }
  0x34   :  { %v688_v42 = vor.u32 %v826_v40, %v687_v39  ;;  %s568_s2 = sshll.u32 %s967_s0, 4  ;;  %s569_s2 = int_to_ptr.vmem [resolvable:$true] %s568_s2 }
  0x35   :  { %515 = vmatpush.bf16.msrb.mxu0 %v780_v62 }
  0x36   :  { %522 = vmatpush.bf16.msrb.mxu1 %v664_v0  ;;  %v137_v0 = vperm.slane %v133_v44, 2 }
  0x37   :  { %502 = vmatpush.bf16.msrb.mxu2 %v684_v63  ;;  %535 = vmatpush.bf16.msrb.mxu3 %v760_v1 }
  0x3a   :  { %503 = vmatmul.bf16.vlgmr.msrb.gmra.mxu2 %v1003_v56  ;;  %523 = vmatpush.bf16.msrb.mxu1 %v652_v10 }
  0x3b   :  { %553 = vmatpush.bf16.msra.mxu2 %v796_v7  ;;  %536 = vmatpush.bf16.msrb.mxu3 %v748_v11 }
  0x3e   :  { %524 = vmatpush.bf16.msrb.mxu1 %v640_v17 }
  0x3f   :  { %554 = vmatpush.bf16.msra.mxu2 %v784_v16  ;;  %537 = vmatpush.bf16.msrb.mxu3 %v736_v18 }
  0x40   :  { %798 = vmatmul.msk.bf16.vlgmr.msrb.gmra.mxu0 %vm439_vm0, %v997_v6 }
  0x42   :  { %525 = vmatpush.bf16.msrb.mxu1 %v628_v23 }
  0x43   :  { %538 = vmatpush.bf16.msrb.mxu3 %v724_v24 }
  0x46   :  { %526 = vmatpush.bf16.msrb.mxu1 %v616_v29 }
  0x47   :  { %539 = vmatpush.bf16.msrb.mxu3 %v712_v30 }
  0x4a   :  { %799 = vmatmul.msk.bf16.vlgmr.msra.gmra.mxu2 %vm439_vm0, %v997_v6  ;;  %527 = vmatpush.bf16.msrb.mxu1 %v604_v35  ;;  %v136_v6 = vperm.slane %v133_v44, 1 }
  0x4b   :  { %540 = vmatpush.bf16.msrb.mxu3 %v700_v36 }
  0x4e   :  { %528 = vmatpush.bf16.msrb.mxu1 %v592_v41 }
  0x4f   :  { %541 = vmatpush.bf16.msrb.mxu3 %v688_v42 }
  0x51   :  { %529 = vmatmul.bf16.vlgmr.msrb.gmra.mxu1 %v1001_v55 }
  0x52   :  { %542 = vmatmul.bf16.vlgmr.msrb.gmra.mxu3 %v1003_v56 }
  0xa4   :  { %v478_v43 = vpop.f32.mrf.mxu2 }
  0xac   :  { %v480_v46 = vpop.f32.mrf.mxu2 }
  0xad   :  { %v452_v47 = vpop.f32.mrf.mxu0 }
  0xae   :  { %v465_v48 = vpop.f32.mrf.mxu1  ;;  %v453_v49 = vadd.f32 %v452_v47, %v135_v45 }
  0xb0   :  { %v466_v50 = vadd.f32 %v465_v48, %v453_v49 }
  0xb2   :  { %v479_v51 = vadd.f32 %v478_v43, %v466_v50 }
  0xb4   :  { %560 = vst [vmem:[#allocation8] sm:$0xff] %v479_v51 }
  0xb5   :  { %v491_v52 = vpop.f32.mrf.mxu3  ;;  %v454_v53 = vpop.f32.mrf.mxu0 }
  0xb6   :  { %v467_v54 = vpop.f32.mrf.mxu1  ;;  %v492_v57 = vadd.f32 %v491_v52, %v136_v6 }
  0xbd   :  { %v504_v58 = vpop.f32.mrf.mxu2  ;;  %v493_v55 = vpop.f32.mrf.mxu3 }
  0xbe   :  { %v505_v59 = vadd.f32 %v504_v58, %v492_v57  ;;  %v517_v60 = vpop.f32.mrf.mxu0 }
  0xc0   :  { %v518_v56 = vadd.f32 %v517_v60, %v505_v59 }
  0xc2   :  { %561 = vst [vmem:[#allocation8 + $0x8] sm:$0xff] %v518_v56 }
  0xc5   :  { %v506_v61 = vpop.f32.mrf.mxu2 }
  0xc6   :  { %v519_v62 = vpop.f32.mrf.mxu0 }
  0xcd   :  { %v556_v63 = vpop.f32.mrf.mxu2 }
  0xce   :  { %v530_v1 = vpop.f32.mrf.mxu1 }
  0xcf   :  { %v531_v2 = vadd.f32 %v530_v1, %v137_v0 }
  0xd5   :  { %v558_v3 = vpop.f32.mrf.mxu2  ;;  %v543_v4 = vpop.f32.mrf.mxu3 }
  0xd6   :  { %v544_v5 = vadd.f32 %v543_v4, %v531_v2  ;;  %v532_v7 = vpop.f32.mrf.mxu1 }
  0xd8   :  { %v557_v8 = vadd.f32 %v556_v63, %v544_v5 }
  0xda   :  { %562 = vst.msk [vmem:[#allocation8 + $0x10] sm:$0xff] %vm439_vm0, %v557_v8 }
  0xdb   :  { %573 = dma.vmem_to_hbm [thread:$0]  %s569_s2, 384, %s571_s30, [#allocation4]  }
  0xdd   :  { %v545_v9 = vpop.f32.mrf.mxu3 }
  0xde   :  { %960 = dma.done.wait [#allocation4], 384  }
  0xdf   :  { %961 = vsyncadd [#allocation4], 4294966912 }
  0xe0   :  { %578 = vsyncpa [#allocation3], 1 }
  0xe1   :  { %579 = vsyncpa [#allocation6], 1 }
  0xe2   :  { %580 = vsyncpa [#allocation4], 1 }

</bundles_post_ra>
